<compile_context>
chip_gen: v6e
topology: v6e:2x2x1
jax: 0.10.0
libtpu: 0.0.40
codegen_flags: <defaults>
</compile_context>

<pallas_src>
import functools

import jax
import jax.numpy as jnp
import numpy as np
from jax import lax
from jax.experimental import pallas as pl
from jax.experimental.pallas import tpu as pltpu

EPS = 1e-5  # nn.BatchNorm2d default


def _round_up(x, m):
    return (x + m - 1) // m * m


def _vmem_limit_bytes(step_bytes):
    """Explicit scoped-VMEM limit: double-buffered operands + scratch headroom,
    clamped to a range that is valid on v5e/v6e (128 MiB) and v7x (64 MiB)."""
    return int(min(max(3 * step_bytes + (4 << 20), 16 << 20), 48 << 20))


# ----------------------------- Pallas kernels ------------------------------ #
def _matmul_stats_kernel(x_ref, w_ref, y_ref, sum_ref, sq_ref):
    """One (TILE_M, K_pad) @ (K_pad, C_pad) MXU tile.

    Stores the conv tile in bf16 plus per-tile partial channel sum /
    sum-of-squares computed from the f32 accumulator, so the M grid axis can
    be 'parallel' (v7x megacore); the tiny cross-tile reduction is host-side.
    Zero-padded patch rows contribute exactly 0 to both accumulators.
    """
    acc = jnp.dot(x_ref[...], w_ref[...], preferred_element_type=jnp.float32)
    y_ref[...] = acc.astype(y_ref.dtype)
    sum_ref[0] = jnp.sum(acc, axis=0, keepdims=True)
    sq_ref[0] = jnp.sum(acc * acc, axis=0, keepdims=True)


def _bn_res_relu_kernel(apply_relu, has_res, y_ref, scale_ref, shift_ref, *rest):
    """Tiled normalize with pre-folded (scale, shift) (+ residual) (+ ReLU)."""
    if has_res:
        res_ref, out_ref = rest
    else:
        (out_ref,) = rest
        res_ref = None
    y = y_ref[...].astype(jnp.float32) * scale_ref[...] + shift_ref[...]
    if has_res:
        y = y + res_ref[...].astype(jnp.float32)
    if apply_relu:
        y = jnp.maximum(y, 0.0)
    out_ref[...] = y.astype(out_ref.dtype)


def _fused_conv_bn_kernel(inv_m, apply_relu, has_res,
                          x_ref, w_ref, g_ref, b_ref, *rest):
    """Small-layer path: matmul + batch stats + BN (+res) (+ReLU) in one call,
    avoiding the HBM round trip of the conv output entirely."""
    if has_res:
        res_ref, out_ref = rest
    else:
        (out_ref,) = rest
        res_ref = None
    acc = jnp.dot(x_ref[...], w_ref[...], preferred_element_type=jnp.float32)
    s = jnp.sum(acc, axis=0, keepdims=True)          # padded rows add 0
    sq = jnp.sum(acc * acc, axis=0, keepdims=True)
    mean = s * inv_m
    var = jnp.maximum(sq * inv_m - mean * mean, 0.0)
    inv_std = lax.rsqrt(var + EPS)                   # EUP slot
    scale = g_ref[...] * inv_std
    shift = b_ref[...] - mean * scale
    y = acc * scale + shift
    if has_res:
        y = y + res_ref[...].astype(jnp.float32)
    if apply_relu:
        y = jnp.maximum(y, 0.0)
    out_ref[...] = y.astype(out_ref.dtype)


# ------------------------------ glue (JAX) --------------------------------- #
def _im2col(x_nhwc, ksize, stride, padding):
    N, H, W, C = x_nhwc.shape
    xp = jnp.pad(x_nhwc, ((0, 0), (padding, padding), (padding, padding), (0, 0)))
    Ho = (H + 2 * padding - ksize) // stride + 1
    Wo = (W + 2 * padding - ksize) // stride + 1
    cols = []
    for dy in range(ksize):
        for dx in range(ksize):
            sl = xp[:, dy:dy + (Ho - 1) * stride + 1:stride,
                       dx:dx + (Wo - 1) * stride + 1:stride, :]
            cols.append(sl)
    patches = jnp.concatenate(cols, axis=-1)          # order: (dy, dx, cin)
    return patches.reshape(N * Ho * Wo, ksize * ksize * C), (N, Ho, Wo)


def conv_bn_pallas(x_nhwc, weight, gamma, beta, *, stride, padding,
                   apply_relu, residual=None):
    """Conv2d (bias cancelled by training-mode BN) + BatchNorm (+res) (+ReLU).

    Returns the NHWC result in bf16 (the next stage consumes bf16 anyway).
    """
    Cout, Cin, kh, kw = weight.shape
    assert kh == kw

    patches, (N, Ho, Wo) = _im2col(x_nhwc.astype(jnp.bfloat16), kh, stride, padding)
    M, K = patches.shape

    K_pad = _round_up(K, 128)
    C_pad = _round_up(Cout, 128)
    TILE_M = min(1024, _round_up(M, 8))
    M_pad = _round_up(M, TILE_M)        # no row pad when TILE_M divides M
    n_tiles = M_pad // TILE_M

    patches_p = jnp.pad(patches, ((0, M_pad - M), (0, K_pad - K)))

    # (Cout, Cin, kh, kw) -> (kh, kw, Cin, Cout) -> (K, Cout), matches im2col.
    w_mat = jnp.transpose(weight, (2, 3, 1, 0)).reshape(K, Cout)
    w_p = jnp.pad(w_mat.astype(jnp.bfloat16), ((0, K_pad - K), (0, C_pad - Cout)))
    g_p = jnp.pad(gamma.reshape(1, Cout).astype(jnp.float32),
                  ((0, 0), (0, C_pad - Cout)))
    b_p = jnp.pad(beta.reshape(1, Cout).astype(jnp.float32),
                  ((0, 0), (0, C_pad - Cout)))

    has_res = residual is not None
    res_p = None
    if has_res:
        res_p = jnp.pad(residual.reshape(M, Cout).astype(jnp.bfloat16),
                        ((0, M_pad - M), (0, C_pad - Cout)))

    # ------------------- fused small-layer path (n_tiles == 1) -------------- #
    fused_bytes = (M_pad * K_pad + K_pad * C_pad + 2 * M_pad * C_pad) * 2 \
        + 2 * M_pad * C_pad * 4                       # bf16 operands + f32 acc
    if n_tiles == 1 and fused_bytes < (20 << 20):
        in_specs = [
            pl.BlockSpec((M_pad, K_pad), lambda i: (0, 0)),
            pl.BlockSpec((K_pad, C_pad), lambda i: (0, 0)),
            pl.BlockSpec((1, C_pad), lambda i: (0, 0)),
            pl.BlockSpec((1, C_pad), lambda i: (0, 0)),
        ]
        args = [patches_p, w_p, g_p, b_p]
        if has_res:
            in_specs.append(pl.BlockSpec((M_pad, C_pad), lambda i: (0, 0)))
            args.append(res_p)
        out = pl.pallas_call(
            functools.partial(_fused_conv_bn_kernel, 1.0 / M, apply_relu, has_res),
            grid=(1,),
            in_specs=in_specs,
            out_specs=pl.BlockSpec((M_pad, C_pad), lambda i: (0, 0)),
            out_shape=jax.ShapeDtypeStruct((M_pad, C_pad), jnp.bfloat16),
            compiler_params=pltpu.CompilerParams(
                dimension_semantics=("arbitrary",),
                vmem_limit_bytes=_vmem_limit_bytes(fused_bytes)),
        )(*args)
        return out[:M, :Cout].reshape(N, Ho, Wo, Cout)

    # -------- Kernel A: tiled matmul + per-tile partial stats (parallel) ---- #
    step_bytes_a = (TILE_M * K_pad + K_pad * C_pad + TILE_M * C_pad) * 2 \
        + 2 * C_pad * 4 + 2 * TILE_M * C_pad * 4      # + f32 acc scratch
    conv_out, part_sum, part_sq = pl.pallas_call(
        _matmul_stats_kernel,
        grid=(n_tiles,),
        in_specs=[
            pl.BlockSpec((TILE_M, K_pad), lambda i: (i, 0)),
            pl.BlockSpec((K_pad, C_pad), lambda i: (0, 0)),
        ],
        out_specs=[
            pl.BlockSpec((TILE_M, C_pad), lambda i: (i, 0)),
            pl.BlockSpec((1, 1, C_pad), lambda i: (i, 0, 0)),
            pl.BlockSpec((1, 1, C_pad), lambda i: (i, 0, 0)),
        ],
        out_shape=[
            jax.ShapeDtypeStruct((M_pad, C_pad), jnp.bfloat16),
            jax.ShapeDtypeStruct((n_tiles, 1, C_pad), jnp.float32),
            jax.ShapeDtypeStruct((n_tiles, 1, C_pad), jnp.float32),
        ],
        compiler_params=pltpu.CompilerParams(
            dimension_semantics=("parallel",),
            vmem_limit_bytes=_vmem_limit_bytes(step_bytes_a)),
    )(patches_p, w_p)

    # ------- tiny host-side stat reduction + folded (scale, shift) ---------- #
    # Single-pass E[x^2]-E[x]^2 in f32; fine at these sizes (see review note).
    ch_sum = jnp.sum(part_sum, axis=0)                # (1, C_pad)
    ch_sq = jnp.sum(part_sq, axis=0)
    mean = ch_sum * (1.0 / M)
    var = jnp.maximum(ch_sq * (1.0 / M) - mean * mean, 0.0)
    inv_std = lax.rsqrt(var + EPS)
    scale = g_p * inv_std                             # (1, C_pad), f32
    shift = b_p - mean * scale

    # -------- Kernel B: tiled normalize + residual + ReLU (parallel) -------- #
    step_bytes_b = (TILE_M * C_pad) * 2 * (3 if has_res else 2) + 2 * C_pad * 4
    args = [conv_out, scale, shift]
    in_specs = [
        pl.BlockSpec((TILE_M, C_pad), lambda i: (i, 0)),
        pl.BlockSpec((1, C_pad), lambda i: (0, 0)),
        pl.BlockSpec((1, C_pad), lambda i: (0, 0)),
    ]
    if has_res:
        args.append(res_p)
        in_specs.append(pl.BlockSpec((TILE_M, C_pad), lambda i: (i, 0)))

    out = pl.pallas_call(
        functools.partial(_bn_res_relu_kernel, apply_relu, has_res),
        grid=(n_tiles,),
        in_specs=in_specs,
        out_specs=pl.BlockSpec((TILE_M, C_pad), lambda i: (i, 0)),
        out_shape=jax.ShapeDtypeStruct((M_pad, C_pad), jnp.bfloat16),
        compiler_params=pltpu.CompilerParams(
            dimension_semantics=("parallel",),
            vmem_limit_bytes=_vmem_limit_bytes(step_bytes_b)),
    )(*args)

    return out[:M, :Cout].reshape(N, Ho, Wo, Cout)


def residual_block_forward(x_nchw, params, in_channel, out_channel, stride):
    x = jnp.transpose(x_nchw, (0, 2, 3, 1)).astype(jnp.bfloat16)   # NCHW->NHWC

    # downsample branch (1x1 conv + BN) if shape changes, else identity
    if in_channel != out_channel or stride != 1:
        b = conv_bn_pallas(x, params["wd"], params["gd"], params["betad"],
                           stride=stride, padding=0, apply_relu=False)
    else:
        b = x

    # t = relu(bn(conv1(x)))   (conv bias cancelled by training-mode BN)
    t = conv_bn_pallas(x, params["w1"], params["g1"], params["beta1"],
                       stride=stride, padding=1, apply_relu=True)
    # t = relu(bn(conv2(t)) + b)
    t = conv_bn_pallas(t, params["w2"], params["g2"], params["beta2"],
                       stride=1, padding=1, apply_relu=True, residual=b)
    return jnp.transpose(t, (0, 3, 1, 2)).astype(jnp.float32)      # NHWC->NCHW


# --------------------------- pure-JAX reference ----------------------------- #
def _conv_bn_ref(x, w, cb, g, beta, stride, padding, relu, residual=None):
    # Conv inputs cast to bf16 to match the kernel's MXU precision; BN in f32.
    y = lax.conv_general_dilated(
        x.astype(jnp.bfloat16), w.astype(jnp.bfloat16), (stride, stride),
        [(padding, padding), (padding, padding)],
        dimension_numbers=("NHWC", "OIHW", "NHWC"),
        preferred_element_type=jnp.float32)
    y = y + cb.reshape(1, 1, 1, -1)                  # bias (cancelled by BN)
    mean = jnp.mean(y, axis=(0, 1, 2), keepdims=True)
    var = jnp.mean((y - mean) ** 2, axis=(0, 1, 2), keepdims=True)
    y = (y - mean) / jnp.sqrt(var + EPS) * g.reshape(1, 1, 1, -1) \
        + beta.reshape(1, 1, 1, -1)
    if residual is not None:
        y = y + residual
    if relu:
        y = jnp.maximum(y, 0.0)
    return y


def residual_block_ref(x_nchw, params, in_channel, out_channel, stride):
    x = jnp.transpose(x_nchw, (0, 2, 3, 1))
    if in_channel != out_channel or stride != 1:
        b = _conv_bn_ref(x, params["wd"], params["bd"], params["gd"],
                         params["betad"], stride, 0, False)
    else:
        b = x
    t = _conv_bn_ref(x, params["w1"], params["b1"], params["g1"],
                     params["beta1"], stride, 1, True)
    t = _conv_bn_ref(t, params["w2"], params["b2"], params["g2"],
                     params["beta2"], 1, 1, True, residual=b)
    return jnp.transpose(t, (0, 3, 1, 2))


# ---------------------------------- main ------------------------------------ #
def _make_params(key, in_c, out_c, with_down):
    ks = jax.random.split(key, 12)
    p = {
        "w1": 0.1 * jax.random.normal(ks[0], (out_c, in_c, 3, 3), jnp.float32),
        "b1": 0.1 * jax.random.normal(ks[1], (out_c,), jnp.float32),
        "g1": 1.0 + 0.1 * jax.random.normal(ks[2], (out_c,), jnp.float32),
        "beta1": 0.1 * jax.random.normal(ks[3], (out_c,), jnp.float32),
        "w2": 0.1 * jax.random.normal(ks[4], (out_c, out_c, 3, 3), jnp.float32),
        "b2": 0.1 * jax.random.normal(ks[5], (out_c,), jnp.float32),
        "g2": 1.0 + 0.1 * jax.random.normal(ks[6], (out_c,), jnp.float32),
        "beta2": 0.1 * jax.random.normal(ks[7], (out_c,), jnp.float32),
    }
    if with_down:
        p.update({
            "wd": 0.1 * jax.random.normal(ks[8], (out_c, in_c, 1, 1), jnp.float32),
            "bd": 0.1 * jax.random.normal(ks[9], (out_c,), jnp.float32),
            "gd": 1.0 + 0.1 * jax.random.normal(ks[10], (out_c,), jnp.float32),
            "betad": 0.1 * jax.random.normal(ks[11], (out_c,), jnp.float32),
        })
    return p


if __name__ == "__main__":
    key = jax.random.PRNGKey(0)
    k1, k2, k3, kx1, kx2, kx3 = jax.random.split(key, 6)

    fwd = jax.jit(residual_block_forward, static_argnums=(2, 3, 4))

    # Case 1: downsample path (in != out, stride 2) -> fused small-layer path.
    in_c, out_c, stride = 4, 8, 2
    params1 = _make_params(k1, in_c, out_c, with_down=True)
    x1 = jax.random.normal(kx1, (2, in_c, 16, 16), jnp.float32)    # NCHW
    out1 = jax.block_until_ready(fwd(x1, params1, in_c, out_c, stride))
    ref1 = residual_block_ref(x1, params1, in_c, out_c, stride)
    np.testing.assert_allclose(np.asarray(out1), np.asarray(ref1),
                               rtol=2e-2, atol=2e-2)  # bf16 pipeline tolerance

    # Case 2: identity skip (in == out, stride 1) -> fused path.
    c = 8
    params2 = _make_params(k2, c, c, with_down=False)
    x2 = jax.random.normal(kx2, (2, c, 16, 16), jnp.float32)       # NCHW
    out2 = jax.block_until_ready(fwd(x2, params2, c, c, 1))
    ref2 = residual_block_ref(x2, params2, c, c, 1)
    np.testing.assert_allclose(np.asarray(out2), np.asarray(ref2),
                               rtol=2e-2, atol=2e-2)

    # Case 3: larger spatial extent -> exercises the two-kernel tiled path
    # (M = 2*32*32 = 2048 rows -> 2 tiles of 1024, partial-stat reduction).
    params3 = _make_params(k3, c, c, with_down=False)
    x3 = jax.random.normal(kx3, (2, c, 32, 32), jnp.float32)       # NCHW
    out3 = jax.block_until_ready(fwd(x3, params3, c, c, 1))
    ref3 = residual_block_ref(x3, params3, c, c, 1)
    np.testing.assert_allclose(np.asarray(out3), np.asarray(ref3),
                               rtol=2e-2, atol=2e-2)

    print("KERNEL_OK")
</pallas_src>

<mosaic_0001>
module attributes {stable_mosaic.version = 11 : i64} {
  func.func @_fused_conv_bn_kernel(%arg0: i32, %arg1: memref<128x128xbf16, #tpu.memory_space<vmem>>, %arg2: memref<128x128xbf16, #tpu.memory_space<vmem>>, %arg3: memref<1x128xf32, #tpu.memory_space<vmem>>, %arg4: memref<1x128xf32, #tpu.memory_space<vmem>>, %arg5: memref<128x128xbf16, #tpu.memory_space<vmem>>) attributes {dimension_semantics = [#tpu.dimension_semantics<arbitrary>], iteration_bounds = array<i64: 1>, scalar_prefetch = 0 : i64, scratch_operands = 0 : i64, tpu.core_type = #tpu.core_type<tc>, window_params = [{pipeline_mode = #tpu.pipeline_mode<synchronous>, transform_indices = @transform_0, window_bounds = array<i64: 128, 128>}, {pipeline_mode = #tpu.pipeline_mode<synchronous>, transform_indices = @transform_1, window_bounds = array<i64: 128, 128>}, {pipeline_mode = #tpu.pipeline_mode<synchronous>, transform_indices = @transform_2, window_bounds = array<i64: 1, 128>}, {pipeline_mode = #tpu.pipeline_mode<synchronous>, transform_indices = @transform_3, window_bounds = array<i64: 1, 128>}, {pipeline_mode = #tpu.pipeline_mode<synchronous>, transform_indices = @transform_4, window_bounds = array<i64: 128, 128>}]} {
    %c0 = arith.constant 0 : index
    %c0_0 = arith.constant 0 : index
    %0 = vector.load %arg1[%c0, %c0_0] : memref<128x128xbf16, #tpu.memory_space<vmem>>, vector<128x128xbf16>
    %c0_1 = arith.constant 0 : index
    %c0_2 = arith.constant 0 : index
    %1 = vector.load %arg2[%c0_1, %c0_2] : memref<128x128xbf16, #tpu.memory_space<vmem>>, vector<128x128xbf16>
    %cst = arith.constant dense<0.000000e+00> : vector<128x128xf32>
    %2 = tpu.matmul %0, %1, %cst {dimension_numbers = #tpu.dot_dimension_numbers<[1], [0], [0], [1], [0, 0, 1, 1], [], []>} : vector<128x128xbf16>, vector<128x128xbf16>, vector<128x128xf32> -> vector<128x128xf32>
    %cst_3 = arith.constant dense<0.000000e+00> : vector<128xf32>
    %3 = vector.multi_reduction <add>, %2, %cst_3 [0] : vector<128x128xf32> to vector<128xf32>
    %4 = vector.shape_cast %3 : vector<128xf32> to vector<1x128xf32>
    %5 = arith.mulf %2, %2 : vector<128x128xf32>
    %cst_4 = arith.constant dense<0.000000e+00> : vector<128xf32>
    %6 = vector.multi_reduction <add>, %5, %cst_4 [0] : vector<128x128xf32> to vector<128xf32>
    %7 = vector.shape_cast %6 : vector<128xf32> to vector<1x128xf32>
    %cst_5 = arith.constant 7.812500e-03 : f32
    %8 = vector.broadcast %cst_5 : f32 to vector<1x128xf32>
    %9 = arith.mulf %4, %8 : vector<1x128xf32>
    %cst_6 = arith.constant 7.812500e-03 : f32
    %10 = vector.broadcast %cst_6 : f32 to vector<1x128xf32>
    %11 = arith.mulf %7, %10 : vector<1x128xf32>
    %12 = arith.mulf %9, %9 : vector<1x128xf32>
    %13 = arith.subf %11, %12 : vector<1x128xf32>
    %cst_7 = arith.constant 0.000000e+00 : f32
    %14 = vector.broadcast %cst_7 : f32 to vector<1x128xf32>
    %15 = arith.maximumf %13, %14 : vector<1x128xf32>
    %cst_8 = arith.constant 9.99999974E-6 : f32
    %16 = vector.broadcast %cst_8 : f32 to vector<1x128xf32>
    %17 = arith.addf %15, %16 : vector<1x128xf32>
    %18 = math.rsqrt %17 : vector<1x128xf32>
    %c0_9 = arith.constant 0 : index
    %c0_10 = arith.constant 0 : index
    %19 = vector.load %arg3[%c0_9, %c0_10] : memref<1x128xf32, #tpu.memory_space<vmem>>, vector<1x128xf32>
    %20 = arith.mulf %19, %18 : vector<1x128xf32>
    %c0_11 = arith.constant 0 : index
    %c0_12 = arith.constant 0 : index
    %21 = vector.load %arg4[%c0_11, %c0_12] : memref<1x128xf32, #tpu.memory_space<vmem>>, vector<1x128xf32>
    %22 = arith.mulf %9, %20 : vector<1x128xf32>
    %23 = arith.subf %21, %22 : vector<1x128xf32>
    %24 = vector.broadcast %20 : vector<1x128xf32> to vector<128x128xf32>
    %25 = arith.mulf %2, %24 : vector<128x128xf32>
    %26 = vector.broadcast %23 : vector<1x128xf32> to vector<128x128xf32>
    %27 = arith.addf %25, %26 : vector<128x128xf32>
    %cst_13 = arith.constant 0.000000e+00 : f32
    %28 = vector.broadcast %cst_13 : f32 to vector<128x128xf32>
    %29 = arith.maximumf %27, %28 : vector<128x128xf32>
    %30 = arith.truncf %29 : vector<128x128xf32> to vector<128x128xbf16>
    %c0_14 = arith.constant 0 : index
    %c0_15 = arith.constant 0 : index
    %31 = vector.load %arg5[%c0_14, %c0_15] : memref<128x128xbf16, #tpu.memory_space<vmem>>, vector<128x128xbf16>
    tpu.vector_store %arg5[%c0_14, %c0_15], %30 {strides = array<i32>} : memref<128x128xbf16, #tpu.memory_space<vmem>>, vector<128x128xbf16>,
    return
  }
  func.func @transform_0(%arg0: i32) -> (i32, i32) {
    %c0_i32 = arith.constant 0 : i32
    %c0_i32_0 = arith.constant 0 : i32
    %c0_i32_1 = arith.constant 0 : i32
    return %c0_i32, %c0_i32_0 : i32, i32
  }
  func.func @transform_1(%arg0: i32) -> (i32, i32) {
    %c0_i32 = arith.constant 0 : i32
    %c0_i32_0 = arith.constant 0 : i32
    %c0_i32_1 = arith.constant 0 : i32
    return %c0_i32, %c0_i32_0 : i32, i32
  }
  func.func @transform_2(%arg0: i32) -> (i32, i32) {
    %c0_i32 = arith.constant 0 : i32
    %c0_i32_0 = arith.constant 0 : i32
    %c0_i32_1 = arith.constant 0 : i32
    return %c0_i32, %c0_i32_0 : i32, i32
  }
  func.func @transform_3(%arg0: i32) -> (i32, i32) {
    %c0_i32 = arith.constant 0 : i32
    %c0_i32_0 = arith.constant 0 : i32
    %c0_i32_1 = arith.constant 0 : i32
    return %c0_i32, %c0_i32_0 : i32, i32
  }
  func.func @transform_4(%arg0: i32) -> (i32, i32) {
    %c0_i32 = arith.constant 0 : i32
    %c0_i32_0 = arith.constant 0 : i32
    %c0_i32_1 = arith.constant 0 : i32
    return %c0_i32, %c0_i32_0 : i32, i32
  }
}

module attributes {stable_mosaic.version = 11 : i64} {
  func.func @_fused_conv_bn_kernel(%arg0: i32, %arg1: memref<128x128xbf16, #tpu.memory_space<vmem>>, %arg2: memref<128x128xbf16, #tpu.memory_space<vmem>>, %arg3: memref<1x128xf32, #tpu.memory_space<vmem>>, %arg4: memref<1x128xf32, #tpu.memory_space<vmem>>, %arg5: memref<128x128xbf16, #tpu.memory_space<vmem>>) attributes {dimension_semantics = [#tpu.dimension_semantics<arbitrary>], iteration_bounds = array<i64: 1>, scalar_prefetch = 0 : i64, scratch_operands = 0 : i64, tpu.core_type = #tpu.core_type<tc>, window_params = [{pipeline_mode = #tpu.pipeline_mode<synchronous>, transform_indices = @transform_0, window_bounds = array<i64: 128, 128>}, {pipeline_mode = #tpu.pipeline_mode<synchronous>, transform_indices = @transform_1, window_bounds = array<i64: 128, 128>}, {pipeline_mode = #tpu.pipeline_mode<synchronous>, transform_indices = @transform_2, window_bounds = array<i64: 1, 128>}, {pipeline_mode = #tpu.pipeline_mode<synchronous>, transform_indices = @transform_3, window_bounds = array<i64: 1, 128>}, {pipeline_mode = #tpu.pipeline_mode<synchronous>, transform_indices = @transform_4, window_bounds = array<i64: 128, 128>}]} {
    %c0 = arith.constant 0 : index
    %c0_0 = arith.constant 0 : index
    %0 = vector.load %arg1[%c0, %c0_0] : memref<128x128xbf16, #tpu.memory_space<vmem>>, vector<128x128xbf16>
    %c0_1 = arith.constant 0 : index
    %c0_2 = arith.constant 0 : index
    %1 = vector.load %arg2[%c0_1, %c0_2] : memref<128x128xbf16, #tpu.memory_space<vmem>>, vector<128x128xbf16>
    %cst = arith.constant dense<0.000000e+00> : vector<128x128xf32>
    %2 = tpu.matmul %0, %1, %cst {dimension_numbers = #tpu.dot_dimension_numbers<[1], [0], [0], [1], [0, 0, 1, 1], [], []>} : vector<128x128xbf16>, vector<128x128xbf16>, vector<128x128xf32> -> vector<128x128xf32>
    %cst_3 = arith.constant dense<0.000000e+00> : vector<128xf32>
    %3 = vector.multi_reduction <add>, %2, %cst_3 [0] : vector<128x128xf32> to vector<128xf32>
    %4 = vector.shape_cast %3 : vector<128xf32> to vector<1x128xf32>
    %5 = arith.mulf %2, %2 : vector<128x128xf32>
    %cst_4 = arith.constant dense<0.000000e+00> : vector<128xf32>
    %6 = vector.multi_reduction <add>, %5, %cst_4 [0] : vector<128x128xf32> to vector<128xf32>
    %7 = vector.shape_cast %6 : vector<128xf32> to vector<1x128xf32>
    %cst_5 = arith.constant 7.812500e-03 : f32
    %8 = vector.broadcast %cst_5 : f32 to vector<1x128xf32>
    %9 = arith.mulf %4, %8 : vector<1x128xf32>
    %cst_6 = arith.constant 7.812500e-03 : f32
    %10 = vector.broadcast %cst_6 : f32 to vector<1x128xf32>
    %11 = arith.mulf %7, %10 : vector<1x128xf32>
    %12 = arith.mulf %9, %9 : vector<1x128xf32>
    %13 = arith.subf %11, %12 : vector<1x128xf32>
    %cst_7 = arith.constant 0.000000e+00 : f32
    %14 = vector.broadcast %cst_7 : f32 to vector<1x128xf32>
    %15 = arith.maximumf %13, %14 : vector<1x128xf32>
    %cst_8 = arith.constant 9.99999974E-6 : f32
    %16 = vector.broadcast %cst_8 : f32 to vector<1x128xf32>
    %17 = arith.addf %15, %16 : vector<1x128xf32>
    %18 = math.rsqrt %17 : vector<1x128xf32>
    %c0_9 = arith.constant 0 : index
    %c0_10 = arith.constant 0 : index
    %19 = vector.load %arg3[%c0_9, %c0_10] : memref<1x128xf32, #tpu.memory_space<vmem>>, vector<1x128xf32>
    %20 = arith.mulf %19, %18 : vector<1x128xf32>
    %c0_11 = arith.constant 0 : index
    %c0_12 = arith.constant 0 : index
    %21 = vector.load %arg4[%c0_11, %c0_12] : memref<1x128xf32, #tpu.memory_space<vmem>>, vector<1x128xf32>
    %22 = arith.mulf %9, %20 : vector<1x128xf32>
    %23 = arith.subf %21, %22 : vector<1x128xf32>
    %24 = vector.broadcast %20 : vector<1x128xf32> to vector<128x128xf32>
    %25 = arith.mulf %2, %24 : vector<128x128xf32>
    %26 = vector.broadcast %23 : vector<1x128xf32> to vector<128x128xf32>
    %27 = arith.addf %25, %26 : vector<128x128xf32>
    %28 = arith.truncf %27 : vector<128x128xf32> to vector<128x128xbf16>
    %c0_13 = arith.constant 0 : index
    %c0_14 = arith.constant 0 : index
    %29 = vector.load %arg5[%c0_13, %c0_14] : memref<128x128xbf16, #tpu.memory_space<vmem>>, vector<128x128xbf16>
    tpu.vector_store %arg5[%c0_13, %c0_14], %28 {strides = array<i32>} : memref<128x128xbf16, #tpu.memory_space<vmem>>, vector<128x128xbf16>,
    return
  }
  func.func @transform_0(%arg0: i32) -> (i32, i32) {
    %c0_i32 = arith.constant 0 : i32
    %c0_i32_0 = arith.constant 0 : i32
    %c0_i32_1 = arith.constant 0 : i32
    return %c0_i32, %c0_i32_0 : i32, i32
  }
  func.func @transform_1(%arg0: i32) -> (i32, i32) {
    %c0_i32 = arith.constant 0 : i32
    %c0_i32_0 = arith.constant 0 : i32
    %c0_i32_1 = arith.constant 0 : i32
    return %c0_i32, %c0_i32_0 : i32, i32
  }
  func.func @transform_2(%arg0: i32) -> (i32, i32) {
    %c0_i32 = arith.constant 0 : i32
    %c0_i32_0 = arith.constant 0 : i32
    %c0_i32_1 = arith.constant 0 : i32
    return %c0_i32, %c0_i32_0 : i32, i32
  }
  func.func @transform_3(%arg0: i32) -> (i32, i32) {
    %c0_i32 = arith.constant 0 : i32
    %c0_i32_0 = arith.constant 0 : i32
    %c0_i32_1 = arith.constant 0 : i32
    return %c0_i32, %c0_i32_0 : i32, i32
  }
  func.func @transform_4(%arg0: i32) -> (i32, i32) {
    %c0_i32 = arith.constant 0 : i32
    %c0_i32_0 = arith.constant 0 : i32
    %c0_i32_1 = arith.constant 0 : i32
    return %c0_i32, %c0_i32_0 : i32, i32
  }
}

module attributes {stable_mosaic.version = 11 : i64} {
  func.func @_fused_conv_bn_kernel(%arg0: i32, %arg1: memref<128x128xbf16, #tpu.memory_space<vmem>>, %arg2: memref<128x128xbf16, #tpu.memory_space<vmem>>, %arg3: memref<1x128xf32, #tpu.memory_space<vmem>>, %arg4: memref<1x128xf32, #tpu.memory_space<vmem>>, %arg5: memref<128x128xbf16, #tpu.memory_space<vmem>>, %arg6: memref<128x128xbf16, #tpu.memory_space<vmem>>) attributes {dimension_semantics = [#tpu.dimension_semantics<arbitrary>], iteration_bounds = array<i64: 1>, scalar_prefetch = 0 : i64, scratch_operands = 0 : i64, tpu.core_type = #tpu.core_type<tc>, window_params = [{pipeline_mode = #tpu.pipeline_mode<synchronous>, transform_indices = @transform_0, window_bounds = array<i64: 128, 128>}, {pipeline_mode = #tpu.pipeline_mode<synchronous>, transform_indices = @transform_1, window_bounds = array<i64: 128, 128>}, {pipeline_mode = #tpu.pipeline_mode<synchronous>, transform_indices = @transform_2, window_bounds = array<i64: 1, 128>}, {pipeline_mode = #tpu.pipeline_mode<synchronous>, transform_indices = @transform_3, window_bounds = array<i64: 1, 128>}, {pipeline_mode = #tpu.pipeline_mode<synchronous>, transform_indices = @transform_4, window_bounds = array<i64: 128, 128>}, {pipeline_mode = #tpu.pipeline_mode<synchronous>, transform_indices = @transform_5, window_bounds = array<i64: 128, 128>}]} {
    %c0 = arith.constant 0 : index
    %c0_0 = arith.constant 0 : index
    %0 = vector.load %arg1[%c0, %c0_0] : memref<128x128xbf16, #tpu.memory_space<vmem>>, vector<128x128xbf16>
    %c0_1 = arith.constant 0 : index
    %c0_2 = arith.constant 0 : index
    %1 = vector.load %arg2[%c0_1, %c0_2] : memref<128x128xbf16, #tpu.memory_space<vmem>>, vector<128x128xbf16>
    %cst = arith.constant dense<0.000000e+00> : vector<128x128xf32>
    %2 = tpu.matmul %0, %1, %cst {dimension_numbers = #tpu.dot_dimension_numbers<[1], [0], [0], [1], [0, 0, 1, 1], [], []>} : vector<128x128xbf16>, vector<128x128xbf16>, vector<128x128xf32> -> vector<128x128xf32>
    %cst_3 = arith.constant dense<0.000000e+00> : vector<128xf32>
    %3 = vector.multi_reduction <add>, %2, %cst_3 [0] : vector<128x128xf32> to vector<128xf32>
    %4 = vector.shape_cast %3 : vector<128xf32> to vector<1x128xf32>
    %5 = arith.mulf %2, %2 : vector<128x128xf32>
    %cst_4 = arith.constant dense<0.000000e+00> : vector<128xf32>
    %6 = vector.multi_reduction <add>, %5, %cst_4 [0] : vector<128x128xf32> to vector<128xf32>
    %7 = vector.shape_cast %6 : vector<128xf32> to vector<1x128xf32>
    %cst_5 = arith.constant 7.812500e-03 : f32
    %8 = vector.broadcast %cst_5 : f32 to vector<1x128xf32>
    %9 = arith.mulf %4, %8 : vector<1x128xf32>
    %cst_6 = arith.constant 7.812500e-03 : f32
    %10 = vector.broadcast %cst_6 : f32 to vector<1x128xf32>
    %11 = arith.mulf %7, %10 : vector<1x128xf32>
    %12 = arith.mulf %9, %9 : vector<1x128xf32>
    %13 = arith.subf %11, %12 : vector<1x128xf32>
    %cst_7 = arith.constant 0.000000e+00 : f32
    %14 = vector.broadcast %cst_7 : f32 to vector<1x128xf32>
    %15 = arith.maximumf %13, %14 : vector<1x128xf32>
    %cst_8 = arith.constant 9.99999974E-6 : f32
    %16 = vector.broadcast %cst_8 : f32 to vector<1x128xf32>
    %17 = arith.addf %15, %16 : vector<1x128xf32>
    %18 = math.rsqrt %17 : vector<1x128xf32>
    %c0_9 = arith.constant 0 : index
    %c0_10 = arith.constant 0 : index
    %19 = vector.load %arg3[%c0_9, %c0_10] : memref<1x128xf32, #tpu.memory_space<vmem>>, vector<1x128xf32>
    %20 = arith.mulf %19, %18 : vector<1x128xf32>
    %c0_11 = arith.constant 0 : index
    %c0_12 = arith.constant 0 : index
    %21 = vector.load %arg4[%c0_11, %c0_12] : memref<1x128xf32, #tpu.memory_space<vmem>>, vector<1x128xf32>
    %22 = arith.mulf %9, %20 : vector<1x128xf32>
    %23 = arith.subf %21, %22 : vector<1x128xf32>
    %24 = vector.broadcast %20 : vector<1x128xf32> to vector<128x128xf32>
    %25 = arith.mulf %2, %24 : vector<128x128xf32>
    %26 = vector.broadcast %23 : vector<1x128xf32> to vector<128x128xf32>
    %27 = arith.addf %25, %26 : vector<128x128xf32>
    %c0_13 = arith.constant 0 : index
    %c0_14 = arith.constant 0 : index
    %28 = vector.load %arg5[%c0_13, %c0_14] : memref<128x128xbf16, #tpu.memory_space<vmem>>, vector<128x128xbf16>
    %29 = arith.extf %28 : vector<128x128xbf16> to vector<128x128xf32>
    %30 = arith.addf %27, %29 : vector<128x128xf32>
    %cst_15 = arith.constant 0.000000e+00 : f32
    %31 = vector.broadcast %cst_15 : f32 to vector<128x128xf32>
    %32 = arith.maximumf %30, %31 : vector<128x128xf32>
    %33 = arith.truncf %32 : vector<128x128xf32> to vector<128x128xbf16>
    %c0_16 = arith.constant 0 : index
    %c0_17 = arith.constant 0 : index
    %34 = vector.load %arg6[%c0_16, %c0_17] : memref<128x128xbf16, #tpu.memory_space<vmem>>, vector<128x128xbf16>
    tpu.vector_store %arg6[%c0_16, %c0_17], %33 {strides = array<i32>} : memref<128x128xbf16, #tpu.memory_space<vmem>>, vector<128x128xbf16>,
    return
  }
  func.func @transform_0(%arg0: i32) -> (i32, i32) {
    %c0_i32 = arith.constant 0 : i32
    %c0_i32_0 = arith.constant 0 : i32
    %c0_i32_1 = arith.constant 0 : i32
    return %c0_i32, %c0_i32_0 : i32, i32
  }
  func.func @transform_1(%arg0: i32) -> (i32, i32) {
    %c0_i32 = arith.constant 0 : i32
    %c0_i32_0 = arith.constant 0 : i32
    %c0_i32_1 = arith.constant 0 : i32
    return %c0_i32, %c0_i32_0 : i32, i32
  }
  func.func @transform_2(%arg0: i32) -> (i32, i32) {
    %c0_i32 = arith.constant 0 : i32
    %c0_i32_0 = arith.constant 0 : i32
    %c0_i32_1 = arith.constant 0 : i32
    return %c0_i32, %c0_i32_0 : i32, i32
  }
  func.func @transform_3(%arg0: i32) -> (i32, i32) {
    %c0_i32 = arith.constant 0 : i32
    %c0_i32_0 = arith.constant 0 : i32
    %c0_i32_1 = arith.constant 0 : i32
    return %c0_i32, %c0_i32_0 : i32, i32
  }
  func.func @transform_4(%arg0: i32) -> (i32, i32) {
    %c0_i32 = arith.constant 0 : i32
    %c0_i32_0 = arith.constant 0 : i32
    %c0_i32_1 = arith.constant 0 : i32
    return %c0_i32, %c0_i32_0 : i32, i32
  }
  func.func @transform_5(%arg0: i32) -> (i32, i32) {
    %c0_i32 = arith.constant 0 : i32
    %c0_i32_0 = arith.constant 0 : i32
    %c0_i32_1 = arith.constant 0 : i32
    return %c0_i32, %c0_i32_0 : i32, i32
  }
}

</mosaic_0001>

<bundles_post_ra>
// kernel: residual_block_forward.4
= control target key start
LH: loop header
LB: loop body
LE: loop exit
PB: predicated region body
PF: predicated region fallthrough
CT: control target
= control target key end

     0   :  { %s827_s1 = inlined_call_operand.vmem [shape: bf16[128,128], index: 1, kind: input, shape index: {}]   ;;  %s828_s0 = inlined_call_operand.vmem [shape: bf16[128,128], index: 0, kind: input, shape index: {}]   ;;  %s829_s2 = inlined_call_operand.vmem [shape: f32[1,128], index: 2, kind: input, shape index: {}]   ;;  %s830_s3 = inlined_call_operand.vmem [shape: f32[1,128], index: 3, kind: input, shape index: {}]   ;;  %s831_s4 = inlined_call_operand.vmem [shape: bf16[128,128], index: 4, kind: output, shape index: {}]  }
   0x1   :  { %v616_v0 = vld [vmem:[%s827_s1 + $0x38] sm:$0xff]   ;;  %v617_v1 = vld [vmem:[%s827_s1 + $0x30] sm:$0xff]   ;;  %v618_v2 = vld [vmem:[%s827_s1 + $0x28] sm:$0xff]  }
   0x2   :  { %568 = vmatprep.subr.bf16.mxu0 %v616_v0  ;;  %600 = vmatprep.subr.bf16.mxu1 %v616_v0  ;;  %v619_v3 = vld [vmem:[%s827_s1 + $0x20] sm:$0xff]   ;;  %v620_v5 = vld [vmem:[%s827_s1 + $0x18] sm:$0xff]   ;;  %v621_v7 = vld [vmem:[%s827_s1 + $0x10] sm:$0xff]  }
   0x3   :  { %569 = vmatpush3.bf16.msra.mxu0 %v616_v0  ;;  %608 = vmatpush3.bf16.msra.mxu1 %v616_v0  ;;  %v624_v4 = vld [vmem:[%s828_s0] sm:$0xff]   ;;  %v622_v8 = vld [vmem:[%s827_s1 + $0x8] sm:$0xff]   ;;  %v626_v12 = vld [vmem:[%s828_s0 + $0x10] sm:$0xff]  }
   0x4   :  { %570 = vmatprep.subr.bf16.mxu0 %v617_v1  ;;  %601 = vmatprep.subr.bf16.mxu1 %v617_v1  ;;  %v628_v6 = vld [vmem:[%s828_s0 + $0x20] sm:$0xff]   ;;  %v625_v10 = vld [vmem:[%s828_s0 + $0x8] sm:$0xff]   ;;  %v630_v13 = vld [vmem:[%s828_s0 + $0x30] sm:$0xff]  }
   0x5   :  { %584 = vmatprep.mubr.bf16.mxu0 %v624_v4  ;;  %592 = vmatprep.mubr.bf16.mxu1 %v628_v6  ;;  %v623_v9 = vld [vmem:[%s827_s1] sm:$0xff]   ;;  %v629_v11 = vld [vmem:[%s828_s0 + $0x28] sm:$0xff]   ;;  %v627_v14 = vld [vmem:[%s828_s0 + $0x18] sm:$0xff]  }
   0x6   :  { %v631_v15 = vld [vmem:[%s828_s0 + $0x38] sm:$0xff]  }
   0x7   :  { %571 = vmatpush3.bf16.msra.mxu0 %v617_v1  ;;  %609 = vmatpush3.bf16.msra.mxu1 %v617_v1 }
   0x8   :  { %572 = vmatprep.subr.bf16.mxu0 %v618_v2  ;;  %602 = vmatprep.subr.bf16.mxu1 %v618_v2 }
   0xb   :  { %573 = vmatpush3.bf16.msra.mxu0 %v618_v2  ;;  %610 = vmatpush3.bf16.msra.mxu1 %v618_v2 }
   0xc   :  { %574 = vmatprep.subr.bf16.mxu0 %v619_v3  ;;  %603 = vmatprep.subr.bf16.mxu1 %v619_v3 }
   0xf   :  { %575 = vmatpush3.bf16.msra.mxu0 %v619_v3  ;;  %611 = vmatpush3.bf16.msra.mxu1 %v619_v3 }
  0x10   :  { %576 = vmatprep.subr.bf16.mxu0 %v620_v5  ;;  %604 = vmatprep.subr.bf16.mxu1 %v620_v5 }
  0x13   :  { %577 = vmatpush3.bf16.msra.mxu0 %v620_v5  ;;  %612 = vmatpush3.bf16.msra.mxu1 %v620_v5 }
  0x14   :  { %578 = vmatprep.subr.bf16.mxu0 %v621_v7  ;;  %605 = vmatprep.subr.bf16.mxu1 %v621_v7 }
  0x17   :  { %579 = vmatpush3.bf16.msra.mxu0 %v621_v7  ;;  %613 = vmatpush3.bf16.msra.mxu1 %v621_v7 }
  0x18   :  { %580 = vmatprep.subr.bf16.mxu0 %v622_v8  ;;  %606 = vmatprep.subr.bf16.mxu1 %v622_v8 }
  0x1b   :  { %581 = vmatpush3.bf16.msra.mxu0 %v622_v8  ;;  %614 = vmatpush3.bf16.msra.mxu1 %v622_v8 }
  0x1c   :  { %582 = vmatprep.subr.bf16.mxu0 %v623_v9  ;;  %607 = vmatprep.subr.bf16.mxu1 %v623_v9 }
  0x1f   :  { %583 = vmatpush3.bf16.msra.mxu0 %v623_v9  ;;  %615 = vmatpush3.bf16.msra.mxu1 %v623_v9 }
  0x22   :  { %585 = vmatmul.mubr.bf16.vlgmr.msra.gmra.mxu0 %v625_v10  ;;  %593 = vmatmul.mubr.bf16.vlgmr.msra.gmra.mxu1 %v629_v11 }
  0x23   :  { %588 = vmatprep.mubr.bf16.mxu0 %v626_v12  ;;  %596 = vmatprep.mubr.bf16.mxu1 %v630_v13 }
  0x2a   :  { %589 = vmatmul.mubr.bf16.gmra.mxu0 %v627_v14  ;;  %597 = vmatmul.mubr.bf16.gmra.mxu1 %v631_v15 }
  0xe2   :  { %v707_v16 = vpop.f32.mrf.mxu0  ;;  %v709_v17 = vpop.f32.mrf.mxu1 }
  0xe3   :  { %v266_v27 = vmul.f32 %v707_v16, %v707_v16  ;;  %v274_v58 = vmul.f32 %v709_v17, %v709_v17 }
  0xe4   :  { %v711_v18 = vpop.f32.mrf.mxu0  ;;  %v715_v20 = vpop.f32.mrf.mxu1 }
  0xe5   :  { %v264_v22 = vmul.f32 %v711_v18, %v711_v18  ;;  %v272_v51 = vmul.f32 %v715_v20, %v715_v20 }
  0xe6   :  { %v713_v19 = vpop.f32.mrf.mxu0  ;;  %v727_v26 = vpop.f32.mrf.mxu1 }
  0xe7   :  { %v267_v31 = vmul.f32 %v713_v19, %v713_v19  ;;  %v275_v61 = vmul.f32 %v727_v26, %v727_v26 }
  0xe8   :  { %v717_v21 = vpop.f32.mrf.mxu0  ;;  %v739_v35 = vpop.f32.mrf.mxu1 }
  0xe9   :  { %v243_v23 = vadd.f32 %v717_v21, %v711_v18  ;;  %v265_v24 = vmul.f32 %v717_v21, %v717_v21  ;;  %v273_v55 = vmul.f32 %v739_v35, %v739_v35 }
  0xea   :  { %v725_v25 = vpop.f32.mrf.mxu0  ;;  %v749_v43 = vpop.f32.mrf.mxu1 }
  0xeb   :  { %v244_v28 = vadd.f32 %v707_v16, %v243_v23  ;;  %v280_v29 = vadd.f32 %v265_v24, %v264_v22  ;;  %v270_v44 = vmul.f32 %v725_v25, %v725_v25  ;;  %v278_v7 = vmul.f32 %v749_v43, %v749_v43 }
  0xec   :  { %v732_v30 = vpop.f32.mrf.mxu0  ;;  %v757_v50 = vpop.f32.mrf.mxu1 }
  0xed   :  { %v281_v32 = vadd.f32 %v280_v29, %v266_v27  ;;  %v245_v33 = vadd.f32 %v713_v19, %v244_v28  ;;  %v268_v37 = vmul.f32 %v732_v30, %v732_v30  ;;  %v276_v2 = vmul.f32 %v757_v50, %v757_v50 }
  0xee   :  { %v737_v34 = vpop.f32.mrf.mxu0  ;;  %v765_v57 = vpop.f32.mrf.mxu1 }
  0xef   :  { %v246_v36 = vadd.f32 %v245_v33, %v732_v30  ;;  %v282_v38 = vadd.f32 %v281_v32, %v267_v31  ;;  %v271_v47 = vmul.f32 %v737_v34, %v737_v34  ;;  %v279_v10 = vmul.f32 %v765_v57, %v765_v57 }
  0xf0   :  { %v744_v39 = vpop.f32.mrf.mxu0  ;;  %v231_v0 = vpop.f32.mrf.mxu1 }
  0xf1   :  { %v283_v40 = vadd.f32 %v282_v38, %v268_v37  ;;  %v247_v41 = vadd.f32 %v246_v36, %v744_v39  ;;  %v269_v42 = vmul.f32 %v744_v39, %v744_v39  ;;  %v277_v6 = vmul.f32 %v231_v0, %v231_v0 }
  0xf3   :  { %v248_v45 = vadd.f32 %v725_v25, %v247_v41  ;;  %v284_v46 = vadd.f32 %v283_v40, %v269_v42 }
  0xf5   :  { %v249_v48 = vadd.f32 %v737_v34, %v248_v45  ;;  %v285_v49 = vadd.f32 %v284_v46, %v270_v44  ;;  %v314_v45 = vlaneseq }
  0xf7   :  { %v286_v52 = vadd.f32 %v285_v49, %v271_v47  ;;  %v250_v53 = vadd.f32 %v249_v48, %v715_v20  ;;  %v315_v46 = vshrl.u32 %v314_v45, 7  ;;  %v308_v47 = vld [vmem:[%s829_s2] sm:$0x1] }
  0xf9   :  { %v251_v54 = vadd.f32 %v250_v53, %v739_v35  ;;  %v287_v56 = vadd.f32 %v286_v52, %v272_v51  ;;  %v316_v48 = vsub.s32 0, %v315_v46  ;;  %v310_v52 = vld [vmem:[%s830_s3] sm:$0x1] }
  0xfb   :  { %v252_v59 = vadd.f32 %v709_v17, %v251_v54  ;;  %v288_v60 = vadd.f32 %v287_v56, %v273_v55 }
  0xfd   :  { %v289_v62 = vadd.f32 %v288_v60, %v274_v58  ;;  %v253_v63 = vadd.f32 %v727_v26, %v252_v59 }
  0xff   :  { %v254_v1 = vadd.f32 %v253_v63, %v757_v50  ;;  %v290_v3 = vadd.f32 %v289_v62, %v275_v61 }
 0x101   :  { %v291_v4 = vadd.f32 %v290_v3, %v276_v2  ;;  %v255_v5 = vadd.f32 %v254_v1, %v231_v0 }
 0x103   :  { %v256_v8 = vadd.f32 %v749_v43, %v255_v5  ;;  %v292_v9 = vadd.f32 %v291_v4, %v277_v6 }
 0x105   :  { %v257_v11 = vadd.f32 %v765_v57, %v256_v8  ;;  %v293_v12 = vadd.f32 %v292_v9, %v278_v7 }
 0x107   :  { %v258_v13 = vrot.slane %v257_v11, 4  ;;  %v294_v14 = vadd.f32 %v293_v12, %v279_v10 }
 0x109   :  { %v259_v15 = vadd.f32 %v258_v13, %v257_v11  ;;  %v295_v22 = vrot.slane %v294_v14, 4 }
 0x10b   :  { %v260_v23 = vrot.slane %v259_v15, 2  ;;  %v296_v24 = vadd.f32 %v295_v22, %v294_v14 }
 0x10d   :  { %v261_v27 = vadd.f32 %v260_v23, %v259_v15  ;;  %v297_v28 = vrot.slane %v296_v24, 2 }
 0x10f   :  { %v262_v29 = vrot.slane %v261_v27, 1  ;;  %v298_v31 = vadd.f32 %v297_v28, %v296_v24 }
 0x111   :  { %v263_v32 = vadd.f32 %v262_v29, %v261_v27  ;;  %v299_v33 = vrot.slane %v298_v31, 1 }
 0x113   :  { %v300_v36 = vadd.f32 %v299_v33, %v298_v31  ;;  %v301_v37 = vmul.f32 0.0078125, %v263_v32 }
 0x115   :  { %v302_v38 = vmul.f32 0.0078125, %v300_v36  ;;  %v303_v40 = vmul.f32 %v301_v37, %v301_v37 }
 0x117   :  { %v304_v41 = vsub.f32 %v302_v38, %v303_v40 }
 0x119   :  { %v305_v42 = vmax.f32 %v304_v41, 0.0 }
 0x11b   :  { %v306_v44 = vadd.f32 1e-05, %v305_v42 }
 0x11d   :  { %632 = vrsqrt.f32 %v306_v44 }
 0x12a   :  { %v633_v49 = vpop.eup %632 }
 0x12b   :  { %v309_v51 = vmul.f32 %v633_v49, %v308_v47 }
 0x12d   :  { %v311_v53 = vmul.f32 %v309_v51, %v301_v37  ;;  %v317_v54 = vrot.slane %v309_v51, %v316_v48 }
 0x12f   :  { %v312_v55 = vsub.f32 %v310_v52, %v311_v53  ;;  %v319_v56 = vmul.f32 %v317_v54, %v711_v18  ;;  %v320_v58 = vmul.f32 %v317_v54, %v717_v21  ;;  %v321_v59 = vmul.f32 %v707_v16, %v317_v54 }
 0x130   :  { %v322_v60 = vmul.f32 %v713_v19, %v317_v54  ;;  %v323_v61 = vmul.f32 %v317_v54, %v732_v30  ;;  %v324_v62 = vmul.f32 %v317_v54, %v744_v39  ;;  %v325_v63 = vmul.f32 %v725_v25, %v317_v54 }
 0x131   :  { %v326_v1 = vmul.f32 %v737_v34, %v317_v54  ;;  %v327_v2 = vmul.f32 %v317_v54, %v715_v20  ;;  %v328_v3 = vmul.f32 %v317_v54, %v739_v35  ;;  %v329_v18 = vmul.f32 %v709_v17, %v317_v54 }
 0x132   :  { %v330_v21 = vmul.f32 %v727_v26, %v317_v54  ;;  %v339_v4 = vrot.slane %v312_v55, %v316_v48  ;;  %v331_v16 = vmul.f32 %v317_v54, %v757_v50  ;;  %v332_v19 = vmul.f32 %v317_v54, %v231_v0 }
 0x133   :  { %v333_v30 = vmul.f32 %v749_v43, %v317_v54  ;;  %v334_v39 = vmul.f32 %v765_v57, %v317_v54 }
 0x134   :  { %v341_v5 = vadd.f32 %v339_v4, %v319_v56  ;;  %v342_v25 = vadd.f32 %v339_v4, %v320_v58  ;;  %v343_v6 = vadd.f32 %v339_v4, %v321_v59  ;;  %v344_v34 = vadd.f32 %v339_v4, %v322_v60 }
 0x135   :  { %v345_v7 = vadd.f32 %v339_v4, %v323_v61  ;;  %v346_v20 = vadd.f32 %v339_v4, %v324_v62  ;;  %v347_v8 = vadd.f32 %v339_v4, %v325_v63  ;;  %v348_v35 = vadd.f32 %v339_v4, %v326_v1 }
 0x136   :  { %v349_v9 = vadd.f32 %v339_v4, %v327_v2  ;;  %v350_v17 = vadd.f32 %v339_v4, %v328_v3  ;;  %v351_v10 = vadd.f32 %v339_v4, %v329_v18  ;;  %v352_v26 = vadd.f32 %v339_v4, %v330_v21 }
 0x137   :  { %v353_v11 = vadd.f32 %v339_v4, %v331_v16  ;;  %v354_v12 = vadd.f32 %v339_v4, %v332_v19  ;;  %v355_v50 = vadd.f32 %v339_v4, %v333_v30  ;;  %v356_v0 = vadd.f32 %v339_v4, %v334_v39 }
 0x138   :  { %v357_v13 = vmax.f32 %v341_v5, 0.0  ;;  %v358_v43 = vmax.f32 %v342_v25, 0.0  ;;  %v359_v14 = vmax.f32 %v343_v6, 0.0  ;;  %v360_v57 = vmax.f32 %v344_v34, 0.0 }
 0x139   :  { %v361_v15 = vmax.f32 %v345_v7, 0.0  ;;  %v362_v22 = vmax.f32 %v346_v20, 0.0  ;;  %v363_v23 = vmax.f32 %v347_v8, 0.0  ;;  %v364_v24 = vmax.f32 %v348_v35, 0.0 }
 0x13a   :  { %v365_v27 = vmax.f32 %v349_v9, 0.0  ;;  %v366_v28 = vmax.f32 %v350_v17, 0.0  ;;  %v367_v29 = vmax.f32 %v351_v10, 0.0  ;;  %v368_v31 = vmax.f32 %v352_v26, 0.0 }
 0x13b   :  { %v369_v32 = vmax.f32 %v353_v11, 0.0  ;;  %v370_v33 = vmax.f32 %v354_v12, 0.0  ;;  %v371_v36 = vmax.f32 %v355_v50, 0.0  ;;  %v372_v37 = vmax.f32 %v356_v0, 0.0 }
 0x13c   :  { %v508_v38 = vpack.c.bf16 %v358_v43, %v357_v13  ;;  %v513_v40 = vpack.c.bf16 %v360_v57, %v359_v14  ;;  %v518_v41 = vpack.c.bf16 %v362_v22, %v361_v15  ;;  %v523_v42 = vpack.c.bf16 %v364_v24, %v363_v23 }
 0x13d   :  { %v528_v44 = vpack.c.bf16 %v366_v28, %v365_v27  ;;  %v533_v45 = vpack.c.bf16 %v368_v31, %v367_v29  ;;  %v538_v46 = vpack.c.bf16 %v370_v33, %v369_v32  ;;  %v543_v47 = vpack.c.bf16 %v372_v37, %v371_v36 }
 0x13e   :  { %509 = vst [vmem:[%s831_s4] sm:$0xff] %v508_v38   ;;  %545 = vst [vmem:[%s831_s4 + $0x8] sm:$0xff] %v513_v40  }
 0x13f   :  { %546 = vst [vmem:[%s831_s4 + $0x10] sm:$0xff] %v518_v41   ;;  %547 = vst [vmem:[%s831_s4 + $0x18] sm:$0xff] %v523_v42  }
 0x140   :  { %548 = vst [vmem:[%s831_s4 + $0x20] sm:$0xff] %v528_v44   ;;  %549 = vst [vmem:[%s831_s4 + $0x28] sm:$0xff] %v533_v45  }
 0x141   :  { %550 = vst [vmem:[%s831_s4 + $0x30] sm:$0xff] %v538_v46   ;;  %551 = vst [vmem:[%s831_s4 + $0x38] sm:$0xff] %v543_v47  }

// kernel: residual_block_forward.3
= control target key start
LH: loop header
LB: loop body
LE: loop exit
PB: predicated region body
PF: predicated region fallthrough
CT: control target
= control target key end

     0   :  { %s811_s1 = inlined_call_operand.vmem [shape: bf16[128,128], index: 1, kind: input, shape index: {}]   ;;  %s812_s0 = inlined_call_operand.vmem [shape: bf16[128,128], index: 0, kind: input, shape index: {}]   ;;  %s813_s2 = inlined_call_operand.vmem [shape: f32[1,128], index: 2, kind: input, shape index: {}]   ;;  %s814_s3 = inlined_call_operand.vmem [shape: f32[1,128], index: 3, kind: input, shape index: {}]   ;;  %s815_s4 = inlined_call_operand.vmem [shape: bf16[128,128], index: 4, kind: output, shape index: {}]  }
   0x1   :  { %v600_v0 = vld [vmem:[%s811_s1 + $0x38] sm:$0xff]   ;;  %v601_v1 = vld [vmem:[%s811_s1 + $0x30] sm:$0xff]   ;;  %v602_v2 = vld [vmem:[%s811_s1 + $0x28] sm:$0xff]  }
   0x2   :  { %552 = vmatprep.subr.bf16.mxu0 %v600_v0  ;;  %584 = vmatprep.subr.bf16.mxu1 %v600_v0  ;;  %v603_v3 = vld [vmem:[%s811_s1 + $0x20] sm:$0xff]   ;;  %v604_v5 = vld [vmem:[%s811_s1 + $0x18] sm:$0xff]   ;;  %v605_v7 = vld [vmem:[%s811_s1 + $0x10] sm:$0xff]  }
   0x3   :  { %553 = vmatpush3.bf16.msra.mxu0 %v600_v0  ;;  %592 = vmatpush3.bf16.msra.mxu1 %v600_v0  ;;  %v608_v4 = vld [vmem:[%s812_s0] sm:$0xff]   ;;  %v606_v8 = vld [vmem:[%s811_s1 + $0x8] sm:$0xff]   ;;  %v610_v12 = vld [vmem:[%s812_s0 + $0x10] sm:$0xff]  }
   0x4   :  { %554 = vmatprep.subr.bf16.mxu0 %v601_v1  ;;  %585 = vmatprep.subr.bf16.mxu1 %v601_v1  ;;  %v612_v6 = vld [vmem:[%s812_s0 + $0x20] sm:$0xff]   ;;  %v609_v10 = vld [vmem:[%s812_s0 + $0x8] sm:$0xff]   ;;  %v614_v13 = vld [vmem:[%s812_s0 + $0x30] sm:$0xff]  }
   0x5   :  { %568 = vmatprep.mubr.bf16.mxu0 %v608_v4  ;;  %576 = vmatprep.mubr.bf16.mxu1 %v612_v6  ;;  %v607_v9 = vld [vmem:[%s811_s1] sm:$0xff]   ;;  %v613_v11 = vld [vmem:[%s812_s0 + $0x28] sm:$0xff]   ;;  %v611_v14 = vld [vmem:[%s812_s0 + $0x18] sm:$0xff]  }
   0x6   :  { %v615_v15 = vld [vmem:[%s812_s0 + $0x38] sm:$0xff]  }
   0x7   :  { %555 = vmatpush3.bf16.msra.mxu0 %v601_v1  ;;  %593 = vmatpush3.bf16.msra.mxu1 %v601_v1 }
   0x8   :  { %556 = vmatprep.subr.bf16.mxu0 %v602_v2  ;;  %586 = vmatprep.subr.bf16.mxu1 %v602_v2 }
   0xb   :  { %557 = vmatpush3.bf16.msra.mxu0 %v602_v2  ;;  %594 = vmatpush3.bf16.msra.mxu1 %v602_v2 }
   0xc   :  { %558 = vmatprep.subr.bf16.mxu0 %v603_v3  ;;  %587 = vmatprep.subr.bf16.mxu1 %v603_v3 }
   0xf   :  { %559 = vmatpush3.bf16.msra.mxu0 %v603_v3  ;;  %595 = vmatpush3.bf16.msra.mxu1 %v603_v3 }
  0x10   :  { %560 = vmatprep.subr.bf16.mxu0 %v604_v5  ;;  %588 = vmatprep.subr.bf16.mxu1 %v604_v5 }
  0x13   :  { %561 = vmatpush3.bf16.msra.mxu0 %v604_v5  ;;  %596 = vmatpush3.bf16.msra.mxu1 %v604_v5 }
  0x14   :  { %562 = vmatprep.subr.bf16.mxu0 %v605_v7  ;;  %589 = vmatprep.subr.bf16.mxu1 %v605_v7 }
  0x17   :  { %563 = vmatpush3.bf16.msra.mxu0 %v605_v7  ;;  %597 = vmatpush3.bf16.msra.mxu1 %v605_v7 }
  0x18   :  { %564 = vmatprep.subr.bf16.mxu0 %v606_v8  ;;  %590 = vmatprep.subr.bf16.mxu1 %v606_v8 }
  0x1b   :  { %565 = vmatpush3.bf16.msra.mxu0 %v606_v8  ;;  %598 = vmatpush3.bf16.msra.mxu1 %v606_v8 }
  0x1c   :  { %566 = vmatprep.subr.bf16.mxu0 %v607_v9  ;;  %591 = vmatprep.subr.bf16.mxu1 %v607_v9 }
  0x1f   :  { %567 = vmatpush3.bf16.msra.mxu0 %v607_v9  ;;  %599 = vmatpush3.bf16.msra.mxu1 %v607_v9 }
  0x22   :  { %569 = vmatmul.mubr.bf16.vlgmr.msra.gmra.mxu0 %v609_v10  ;;  %577 = vmatmul.mubr.bf16.vlgmr.msra.gmra.mxu1 %v613_v11 }
  0x23   :  { %572 = vmatprep.mubr.bf16.mxu0 %v610_v12  ;;  %580 = vmatprep.mubr.bf16.mxu1 %v614_v13 }
  0x2a   :  { %573 = vmatmul.mubr.bf16.gmra.mxu0 %v611_v14  ;;  %581 = vmatmul.mubr.bf16.gmra.mxu1 %v615_v15 }
  0xe2   :  { %v691_v16 = vpop.f32.mrf.mxu0  ;;  %v693_v17 = vpop.f32.mrf.mxu1 }
  0xe3   :  { %v266_v27 = vmul.f32 %v691_v16, %v691_v16  ;;  %v274_v58 = vmul.f32 %v693_v17, %v693_v17 }
  0xe4   :  { %v695_v18 = vpop.f32.mrf.mxu0  ;;  %v699_v20 = vpop.f32.mrf.mxu1 }
  0xe5   :  { %v264_v22 = vmul.f32 %v695_v18, %v695_v18  ;;  %v272_v51 = vmul.f32 %v699_v20, %v699_v20 }
  0xe6   :  { %v697_v19 = vpop.f32.mrf.mxu0  ;;  %v711_v26 = vpop.f32.mrf.mxu1 }
  0xe7   :  { %v267_v31 = vmul.f32 %v697_v19, %v697_v19  ;;  %v275_v61 = vmul.f32 %v711_v26, %v711_v26 }
  0xe8   :  { %v701_v21 = vpop.f32.mrf.mxu0  ;;  %v723_v35 = vpop.f32.mrf.mxu1 }
  0xe9   :  { %v243_v23 = vadd.f32 %v701_v21, %v695_v18  ;;  %v265_v24 = vmul.f32 %v701_v21, %v701_v21  ;;  %v273_v55 = vmul.f32 %v723_v35, %v723_v35 }
  0xea   :  { %v709_v25 = vpop.f32.mrf.mxu0  ;;  %v733_v43 = vpop.f32.mrf.mxu1 }
  0xeb   :  { %v244_v28 = vadd.f32 %v691_v16, %v243_v23  ;;  %v280_v29 = vadd.f32 %v265_v24, %v264_v22  ;;  %v270_v44 = vmul.f32 %v709_v25, %v709_v25  ;;  %v278_v7 = vmul.f32 %v733_v43, %v733_v43 }
  0xec   :  { %v716_v30 = vpop.f32.mrf.mxu0  ;;  %v741_v50 = vpop.f32.mrf.mxu1 }
  0xed   :  { %v281_v32 = vadd.f32 %v280_v29, %v266_v27  ;;  %v245_v33 = vadd.f32 %v697_v19, %v244_v28  ;;  %v268_v37 = vmul.f32 %v716_v30, %v716_v30  ;;  %v276_v2 = vmul.f32 %v741_v50, %v741_v50 }
  0xee   :  { %v721_v34 = vpop.f32.mrf.mxu0  ;;  %v749_v57 = vpop.f32.mrf.mxu1 }
  0xef   :  { %v246_v36 = vadd.f32 %v245_v33, %v716_v30  ;;  %v282_v38 = vadd.f32 %v281_v32, %v267_v31  ;;  %v271_v47 = vmul.f32 %v721_v34, %v721_v34  ;;  %v279_v10 = vmul.f32 %v749_v57, %v749_v57 }
  0xf0   :  { %v728_v39 = vpop.f32.mrf.mxu0  ;;  %v231_v0 = vpop.f32.mrf.mxu1 }
  0xf1   :  { %v283_v40 = vadd.f32 %v282_v38, %v268_v37  ;;  %v247_v41 = vadd.f32 %v246_v36, %v728_v39  ;;  %v269_v42 = vmul.f32 %v728_v39, %v728_v39  ;;  %v277_v6 = vmul.f32 %v231_v0, %v231_v0 }
  0xf3   :  { %v248_v45 = vadd.f32 %v709_v25, %v247_v41  ;;  %v284_v46 = vadd.f32 %v283_v40, %v269_v42 }
  0xf5   :  { %v249_v48 = vadd.f32 %v721_v34, %v248_v45  ;;  %v285_v49 = vadd.f32 %v284_v46, %v270_v44  ;;  %v314_v45 = vlaneseq }
  0xf7   :  { %v286_v52 = vadd.f32 %v285_v49, %v271_v47  ;;  %v250_v53 = vadd.f32 %v249_v48, %v699_v20  ;;  %v315_v46 = vshrl.u32 %v314_v45, 7  ;;  %v308_v47 = vld [vmem:[%s813_s2] sm:$0x1] }
  0xf9   :  { %v251_v54 = vadd.f32 %v250_v53, %v723_v35  ;;  %v287_v56 = vadd.f32 %v286_v52, %v272_v51  ;;  %v316_v48 = vsub.s32 0, %v315_v46  ;;  %v310_v52 = vld [vmem:[%s814_s3] sm:$0x1] }
  0xfb   :  { %v252_v59 = vadd.f32 %v693_v17, %v251_v54  ;;  %v288_v60 = vadd.f32 %v287_v56, %v273_v55 }
  0xfd   :  { %v289_v62 = vadd.f32 %v288_v60, %v274_v58  ;;  %v253_v63 = vadd.f32 %v711_v26, %v252_v59 }
  0xff   :  { %v254_v1 = vadd.f32 %v253_v63, %v741_v50  ;;  %v290_v3 = vadd.f32 %v289_v62, %v275_v61 }
 0x101   :  { %v291_v4 = vadd.f32 %v290_v3, %v276_v2  ;;  %v255_v5 = vadd.f32 %v254_v1, %v231_v0 }
 0x103   :  { %v256_v8 = vadd.f32 %v733_v43, %v255_v5  ;;  %v292_v9 = vadd.f32 %v291_v4, %v277_v6 }
 0x105   :  { %v257_v11 = vadd.f32 %v749_v57, %v256_v8  ;;  %v293_v12 = vadd.f32 %v292_v9, %v278_v7 }
 0x107   :  { %v258_v13 = vrot.slane %v257_v11, 4  ;;  %v294_v14 = vadd.f32 %v293_v12, %v279_v10 }
 0x109   :  { %v259_v15 = vadd.f32 %v258_v13, %v257_v11  ;;  %v295_v22 = vrot.slane %v294_v14, 4 }
 0x10b   :  { %v260_v23 = vrot.slane %v259_v15, 2  ;;  %v296_v24 = vadd.f32 %v295_v22, %v294_v14 }
 0x10d   :  { %v261_v27 = vadd.f32 %v260_v23, %v259_v15  ;;  %v297_v28 = vrot.slane %v296_v24, 2 }
 0x10f   :  { %v262_v29 = vrot.slane %v261_v27, 1  ;;  %v298_v31 = vadd.f32 %v297_v28, %v296_v24 }
 0x111   :  { %v263_v32 = vadd.f32 %v262_v29, %v261_v27  ;;  %v299_v33 = vrot.slane %v298_v31, 1 }
 0x113   :  { %v300_v36 = vadd.f32 %v299_v33, %v298_v31  ;;  %v301_v37 = vmul.f32 0.0078125, %v263_v32 }
 0x115   :  { %v302_v38 = vmul.f32 0.0078125, %v300_v36  ;;  %v303_v40 = vmul.f32 %v301_v37, %v301_v37 }
 0x117   :  { %v304_v41 = vsub.f32 %v302_v38, %v303_v40 }
 0x119   :  { %v305_v42 = vmax.f32 %v304_v41, 0.0 }
 0x11b   :  { %v306_v44 = vadd.f32 1e-05, %v305_v42 }
 0x11d   :  { %616 = vrsqrt.f32 %v306_v44 }
 0x12a   :  { %v617_v49 = vpop.eup %616 }
 0x12b   :  { %v309_v51 = vmul.f32 %v617_v49, %v308_v47 }
 0x12d   :  { %v311_v53 = vmul.f32 %v309_v51, %v301_v37  ;;  %v317_v54 = vrot.slane %v309_v51, %v316_v48 }
 0x12f   :  { %v312_v55 = vsub.f32 %v310_v52, %v311_v53  ;;  %v319_v56 = vmul.f32 %v317_v54, %v695_v18  ;;  %v320_v58 = vmul.f32 %v317_v54, %v701_v21  ;;  %v321_v59 = vmul.f32 %v691_v16, %v317_v54 }
 0x130   :  { %v322_v60 = vmul.f32 %v697_v19, %v317_v54  ;;  %v323_v61 = vmul.f32 %v317_v54, %v716_v30  ;;  %v324_v62 = vmul.f32 %v317_v54, %v728_v39  ;;  %v325_v63 = vmul.f32 %v709_v25, %v317_v54 }
 0x131   :  { %v326_v1 = vmul.f32 %v721_v34, %v317_v54  ;;  %v327_v2 = vmul.f32 %v317_v54, %v699_v20  ;;  %v328_v3 = vmul.f32 %v317_v54, %v723_v35  ;;  %v329_v18 = vmul.f32 %v693_v17, %v317_v54 }
 0x132   :  { %v330_v21 = vmul.f32 %v711_v26, %v317_v54  ;;  %v339_v4 = vrot.slane %v312_v55, %v316_v48  ;;  %v331_v16 = vmul.f32 %v317_v54, %v741_v50  ;;  %v332_v19 = vmul.f32 %v317_v54, %v231_v0 }
 0x133   :  { %v333_v30 = vmul.f32 %v733_v43, %v317_v54  ;;  %v334_v39 = vmul.f32 %v749_v57, %v317_v54 }
 0x134   :  { %v341_v5 = vadd.f32 %v339_v4, %v319_v56  ;;  %v342_v25 = vadd.f32 %v339_v4, %v320_v58  ;;  %v343_v6 = vadd.f32 %v339_v4, %v321_v59  ;;  %v344_v34 = vadd.f32 %v339_v4, %v322_v60 }
 0x135   :  { %v345_v7 = vadd.f32 %v339_v4, %v323_v61  ;;  %v346_v20 = vadd.f32 %v339_v4, %v324_v62  ;;  %v347_v8 = vadd.f32 %v339_v4, %v325_v63  ;;  %v348_v35 = vadd.f32 %v339_v4, %v326_v1 }
 0x136   :  { %v349_v9 = vadd.f32 %v339_v4, %v327_v2  ;;  %v350_v17 = vadd.f32 %v339_v4, %v328_v3  ;;  %v351_v10 = vadd.f32 %v339_v4, %v329_v18  ;;  %v352_v26 = vadd.f32 %v339_v4, %v330_v21 }
 0x137   :  { %v353_v11 = vadd.f32 %v339_v4, %v331_v16  ;;  %v354_v12 = vadd.f32 %v339_v4, %v332_v19  ;;  %v355_v50 = vadd.f32 %v339_v4, %v333_v30  ;;  %v356_v0 = vadd.f32 %v339_v4, %v334_v39 }
 0x138   :  { %v492_v13 = vpack.c.bf16 %v342_v25, %v341_v5  ;;  %v497_v43 = vpack.c.bf16 %v344_v34, %v343_v6  ;;  %v502_v14 = vpack.c.bf16 %v346_v20, %v345_v7  ;;  %v507_v57 = vpack.c.bf16 %v348_v35, %v347_v8 }
 0x139   :  { %v512_v15 = vpack.c.bf16 %v350_v17, %v349_v9  ;;  %v517_v22 = vpack.c.bf16 %v352_v26, %v351_v10  ;;  %v522_v23 = vpack.c.bf16 %v354_v12, %v353_v11  ;;  %v527_v24 = vpack.c.bf16 %v356_v0, %v355_v50 }
 0x13a   :  { %493 = vst [vmem:[%s815_s4] sm:$0xff] %v492_v13   ;;  %529 = vst [vmem:[%s815_s4 + $0x8] sm:$0xff] %v497_v43  }
 0x13b   :  { %530 = vst [vmem:[%s815_s4 + $0x10] sm:$0xff] %v502_v14   ;;  %531 = vst [vmem:[%s815_s4 + $0x18] sm:$0xff] %v507_v57  }
 0x13c   :  { %532 = vst [vmem:[%s815_s4 + $0x20] sm:$0xff] %v512_v15   ;;  %533 = vst [vmem:[%s815_s4 + $0x28] sm:$0xff] %v517_v22  }
 0x13d   :  { %534 = vst [vmem:[%s815_s4 + $0x30] sm:$0xff] %v522_v23   ;;  %535 = vst [vmem:[%s815_s4 + $0x38] sm:$0xff] %v527_v24  }

// kernel: residual_block_forward.5
= control target key start
LH: loop header
LB: loop body
LE: loop exit
PB: predicated region body
PF: predicated region fallthrough
CT: control target
= control target key end

     0   :  { %s980_s1 = inlined_call_operand.vmem [shape: bf16[128,128], index: 1, kind: input, shape index: {}]   ;;  %s981_s0 = inlined_call_operand.vmem [shape: bf16[128,128], index: 0, kind: input, shape index: {}]   ;;  %s982_s2 = inlined_call_operand.vmem [shape: f32[1,128], index: 2, kind: input, shape index: {}]   ;;  %s983_s4 = inlined_call_operand.vmem [shape: bf16[128,128], index: 4, kind: input, shape index: {}]   ;;  %s984_s3 = inlined_call_operand.vmem [shape: f32[1,128], index: 3, kind: input, shape index: {}]   ;;  %s985_s5 = inlined_call_operand.vmem [shape: bf16[128,128], index: 5, kind: output, shape index: {}]  }
   0x1   :  { %v706_v0 = vld [vmem:[%s980_s1 + $0x38] sm:$0xff]   ;;  %v707_v1 = vld [vmem:[%s980_s1 + $0x30] sm:$0xff]   ;;  %v708_v2 = vld [vmem:[%s980_s1 + $0x28] sm:$0xff]  }
   0x2   :  { %658 = vmatprep.subr.bf16.mxu0 %v706_v0  ;;  %690 = vmatprep.subr.bf16.mxu1 %v706_v0  ;;  %v709_v3 = vld [vmem:[%s980_s1 + $0x20] sm:$0xff]   ;;  %v710_v5 = vld [vmem:[%s980_s1 + $0x18] sm:$0xff]   ;;  %v711_v7 = vld [vmem:[%s980_s1 + $0x10] sm:$0xff]  }
   0x3   :  { %659 = vmatpush3.bf16.msra.mxu0 %v706_v0  ;;  %698 = vmatpush3.bf16.msra.mxu1 %v706_v0  ;;  %v714_v4 = vld [vmem:[%s981_s0] sm:$0xff]   ;;  %v712_v8 = vld [vmem:[%s980_s1 + $0x8] sm:$0xff]   ;;  %v716_v12 = vld [vmem:[%s981_s0 + $0x10] sm:$0xff]  }
   0x4   :  { %660 = vmatprep.subr.bf16.mxu0 %v707_v1  ;;  %691 = vmatprep.subr.bf16.mxu1 %v707_v1  ;;  %v718_v6 = vld [vmem:[%s981_s0 + $0x20] sm:$0xff]   ;;  %v715_v10 = vld [vmem:[%s981_s0 + $0x8] sm:$0xff]   ;;  %v720_v13 = vld [vmem:[%s981_s0 + $0x30] sm:$0xff]  }
   0x5   :  { %674 = vmatprep.mubr.bf16.mxu0 %v714_v4  ;;  %682 = vmatprep.mubr.bf16.mxu1 %v718_v6  ;;  %v713_v9 = vld [vmem:[%s980_s1] sm:$0xff]   ;;  %v719_v11 = vld [vmem:[%s981_s0 + $0x28] sm:$0xff]   ;;  %v717_v14 = vld [vmem:[%s981_s0 + $0x18] sm:$0xff]  }
   0x6   :  { %v721_v15 = vld [vmem:[%s981_s0 + $0x38] sm:$0xff]  }
   0x7   :  { %661 = vmatpush3.bf16.msra.mxu0 %v707_v1  ;;  %699 = vmatpush3.bf16.msra.mxu1 %v707_v1 }
   0x8   :  { %662 = vmatprep.subr.bf16.mxu0 %v708_v2  ;;  %692 = vmatprep.subr.bf16.mxu1 %v708_v2 }
   0xb   :  { %663 = vmatpush3.bf16.msra.mxu0 %v708_v2  ;;  %700 = vmatpush3.bf16.msra.mxu1 %v708_v2 }
   0xc   :  { %664 = vmatprep.subr.bf16.mxu0 %v709_v3  ;;  %693 = vmatprep.subr.bf16.mxu1 %v709_v3 }
   0xf   :  { %665 = vmatpush3.bf16.msra.mxu0 %v709_v3  ;;  %701 = vmatpush3.bf16.msra.mxu1 %v709_v3 }
  0x10   :  { %666 = vmatprep.subr.bf16.mxu0 %v710_v5  ;;  %694 = vmatprep.subr.bf16.mxu1 %v710_v5 }
  0x13   :  { %667 = vmatpush3.bf16.msra.mxu0 %v710_v5  ;;  %702 = vmatpush3.bf16.msra.mxu1 %v710_v5 }
  0x14   :  { %668 = vmatprep.subr.bf16.mxu0 %v711_v7  ;;  %695 = vmatprep.subr.bf16.mxu1 %v711_v7 }
  0x17   :  { %669 = vmatpush3.bf16.msra.mxu0 %v711_v7  ;;  %703 = vmatpush3.bf16.msra.mxu1 %v711_v7 }
  0x18   :  { %670 = vmatprep.subr.bf16.mxu0 %v712_v8  ;;  %696 = vmatprep.subr.bf16.mxu1 %v712_v8 }
  0x1b   :  { %671 = vmatpush3.bf16.msra.mxu0 %v712_v8  ;;  %704 = vmatpush3.bf16.msra.mxu1 %v712_v8 }
  0x1c   :  { %672 = vmatprep.subr.bf16.mxu0 %v713_v9  ;;  %697 = vmatprep.subr.bf16.mxu1 %v713_v9 }
  0x1f   :  { %673 = vmatpush3.bf16.msra.mxu0 %v713_v9  ;;  %705 = vmatpush3.bf16.msra.mxu1 %v713_v9 }
  0x22   :  { %675 = vmatmul.mubr.bf16.vlgmr.msra.gmra.mxu0 %v715_v10  ;;  %683 = vmatmul.mubr.bf16.vlgmr.msra.gmra.mxu1 %v719_v11 }
  0x23   :  { %678 = vmatprep.mubr.bf16.mxu0 %v716_v12  ;;  %686 = vmatprep.mubr.bf16.mxu1 %v720_v13 }
  0x2a   :  { %679 = vmatmul.mubr.bf16.gmra.mxu0 %v717_v14  ;;  %687 = vmatmul.mubr.bf16.gmra.mxu1 %v721_v15 }
  0xe2   :  { %v802_v16 = vpop.f32.mrf.mxu0  ;;  %v804_v17 = vpop.f32.mrf.mxu1 }
  0xe3   :  { %v269_v27 = vmul.f32 %v802_v16, %v802_v16  ;;  %v277_v58 = vmul.f32 %v804_v17, %v804_v17 }
  0xe4   :  { %v806_v18 = vpop.f32.mrf.mxu0  ;;  %v810_v20 = vpop.f32.mrf.mxu1 }
  0xe5   :  { %v267_v22 = vmul.f32 %v806_v18, %v806_v18  ;;  %v275_v51 = vmul.f32 %v810_v20, %v810_v20 }
  0xe6   :  { %v808_v19 = vpop.f32.mrf.mxu0  ;;  %v822_v26 = vpop.f32.mrf.mxu1 }
  0xe7   :  { %v270_v31 = vmul.f32 %v808_v19, %v808_v19  ;;  %v278_v61 = vmul.f32 %v822_v26, %v822_v26 }
  0xe8   :  { %v812_v21 = vpop.f32.mrf.mxu0  ;;  %v834_v35 = vpop.f32.mrf.mxu1 }
  0xe9   :  { %v246_v23 = vadd.f32 %v812_v21, %v806_v18  ;;  %v268_v24 = vmul.f32 %v812_v21, %v812_v21  ;;  %v276_v55 = vmul.f32 %v834_v35, %v834_v35 }
  0xea   :  { %v820_v25 = vpop.f32.mrf.mxu0  ;;  %v844_v43 = vpop.f32.mrf.mxu1 }
  0xeb   :  { %v247_v28 = vadd.f32 %v802_v16, %v246_v23  ;;  %v283_v29 = vadd.f32 %v268_v24, %v267_v22  ;;  %v273_v44 = vmul.f32 %v820_v25, %v820_v25  ;;  %v281_v7 = vmul.f32 %v844_v43, %v844_v43 }
  0xec   :  { %v827_v30 = vpop.f32.mrf.mxu0  ;;  %v852_v50 = vpop.f32.mrf.mxu1 }
  0xed   :  { %v284_v32 = vadd.f32 %v283_v29, %v269_v27  ;;  %v248_v33 = vadd.f32 %v808_v19, %v247_v28  ;;  %v271_v37 = vmul.f32 %v827_v30, %v827_v30  ;;  %v279_v2 = vmul.f32 %v852_v50, %v852_v50 }
  0xee   :  { %v832_v34 = vpop.f32.mrf.mxu0  ;;  %v860_v57 = vpop.f32.mrf.mxu1 }
  0xef   :  { %v249_v36 = vadd.f32 %v248_v33, %v827_v30  ;;  %v285_v38 = vadd.f32 %v284_v32, %v270_v31  ;;  %v274_v47 = vmul.f32 %v832_v34, %v832_v34  ;;  %v282_v10 = vmul.f32 %v860_v57, %v860_v57 }
  0xf0   :  { %v839_v39 = vpop.f32.mrf.mxu0  ;;  %v868_v0 = vpop.f32.mrf.mxu1 }
  0xf1   :  { %v286_v40 = vadd.f32 %v285_v38, %v271_v37  ;;  %v250_v41 = vadd.f32 %v249_v36, %v839_v39  ;;  %v272_v42 = vmul.f32 %v839_v39, %v839_v39  ;;  %v280_v6 = vmul.f32 %v868_v0, %v868_v0 }
  0xf3   :  { %v251_v45 = vadd.f32 %v820_v25, %v250_v41  ;;  %v287_v46 = vadd.f32 %v286_v40, %v272_v42 }
  0xf5   :  { %v252_v48 = vadd.f32 %v832_v34, %v251_v45  ;;  %v288_v49 = vadd.f32 %v287_v46, %v273_v44  ;;  %v317_v45 = vlaneseq }
  0xf7   :  { %v289_v52 = vadd.f32 %v288_v49, %v274_v47  ;;  %v253_v53 = vadd.f32 %v252_v48, %v810_v20  ;;  %v318_v46 = vshrl.u32 %v317_v45, 7  ;;  %v311_v47 = vld [vmem:[%s982_s2] sm:$0x1] }
  0xf8   :  { %v888_v49 = vld [vmem:[%s983_s4] sm:$0xff]  }
  0xf9   :  { %v254_v54 = vadd.f32 %v253_v53, %v834_v35  ;;  %v290_v56 = vadd.f32 %v289_v52, %v275_v51  ;;  %v319_v48 = vsub.s32 0, %v318_v46  ;;  %v893_v51 = vld [vmem:[%s983_s4 + $0x8] sm:$0xff]   ;;  %v898_v53 = vld [vmem:[%s983_s4 + $0x10] sm:$0xff]  }
  0xfb   :  { %v255_v59 = vadd.f32 %v804_v17, %v254_v54  ;;  %v291_v60 = vadd.f32 %v290_v56, %v276_v55  ;;  %v903_v55 = vld [vmem:[%s983_s4 + $0x18] sm:$0xff]   ;;  %v908_v56 = vld [vmem:[%s983_s4 + $0x20] sm:$0xff]  }
  0xfd   :  { %v292_v62 = vadd.f32 %v291_v60, %v277_v58  ;;  %v256_v63 = vadd.f32 %v822_v26, %v255_v59  ;;  %v313_v58 = vld [vmem:[%s984_s3] sm:$0x1]  ;;  %v558_v59 = vunpack.c.l.bf16 %v888_v49  ;;  %v559_v60 = vunpack.c.h.bf16 %v888_v49 }
  0xff   :  { %v257_v1 = vadd.f32 %v256_v63, %v852_v50  ;;  %v293_v3 = vadd.f32 %v292_v62, %v278_v61  ;;  %v562_v61 = vunpack.c.l.bf16 %v893_v51  ;;  %v563_v62 = vunpack.c.h.bf16 %v893_v51  ;;  %v920_v63 = vld [vmem:[%s983_s4 + $0x28] sm:$0xff]  }
 0x101   :  { %v294_v4 = vadd.f32 %v293_v3, %v279_v2  ;;  %v258_v5 = vadd.f32 %v257_v1, %v868_v0  ;;  %v925_v1 = vld [vmem:[%s983_s4 + $0x30] sm:$0xff]  }
 0x103   :  { %v259_v8 = vadd.f32 %v844_v43, %v258_v5  ;;  %v295_v9 = vadd.f32 %v294_v4, %v280_v6  ;;  %v566_v4 = vunpack.c.l.bf16 %v898_v53  ;;  %v567_v5 = vunpack.c.h.bf16 %v898_v53  ;;  %v634_v6 = vld [vmem:[%s983_s4 + $0x38] sm:$0xff]  }
 0x105   :  { %v260_v11 = vadd.f32 %v860_v57, %v259_v8  ;;  %v296_v12 = vadd.f32 %v295_v9, %v281_v7  ;;  %v570_v7 = vunpack.c.l.bf16 %v903_v55  ;;  %v571_v8 = vunpack.c.h.bf16 %v903_v55 }
 0x106   :  { %v574_v9 = vunpack.c.l.bf16 %v908_v56 }
 0x107   :  { %v261_v13 = vrot.slane %v260_v11, 4  ;;  %v297_v14 = vadd.f32 %v296_v12, %v282_v10  ;;  %v575_v10 = vunpack.c.h.bf16 %v908_v56  ;;  %v578_v12 = vunpack.c.l.bf16 %v920_v63 }
 0x109   :  { %v262_v15 = vadd.f32 %v261_v13, %v260_v11  ;;  %v298_v22 = vrot.slane %v297_v14, 4  ;;  %v579_v13 = vunpack.c.h.bf16 %v920_v63 }
 0x10b   :  { %v263_v23 = vrot.slane %v262_v15, 2  ;;  %v299_v24 = vadd.f32 %v298_v22, %v297_v14  ;;  %v582_v14 = vunpack.c.l.bf16 %v925_v1  ;;  %v583_v22 = vunpack.c.h.bf16 %v925_v1 }
 0x10d   :  { %v264_v27 = vadd.f32 %v263_v23, %v262_v15  ;;  %v300_v28 = vrot.slane %v299_v24, 2  ;;  %v586_v23 = vunpack.c.l.bf16 %v634_v6 }
 0x10f   :  { %v265_v29 = vrot.slane %v264_v27, 1  ;;  %v301_v31 = vadd.f32 %v300_v28, %v299_v24  ;;  %v587_v24 = vunpack.c.h.bf16 %v634_v6 }
 0x111   :  { %v266_v32 = vadd.f32 %v265_v29, %v264_v27  ;;  %v302_v33 = vrot.slane %v301_v31, 1 }
 0x113   :  { %v303_v36 = vadd.f32 %v302_v33, %v301_v31  ;;  %v304_v37 = vmul.f32 0.0078125, %v266_v32 }
 0x115   :  { %v305_v38 = vmul.f32 0.0078125, %v303_v36  ;;  %v306_v40 = vmul.f32 %v304_v37, %v304_v37 }
 0x117   :  { %v307_v41 = vsub.f32 %v305_v38, %v306_v40 }
 0x119   :  { %v308_v42 = vmax.f32 %v307_v41, 0.0 }
 0x11b   :  { %v309_v44 = vadd.f32 1e-05, %v308_v42 }
 0x11d   :  { %722 = vrsqrt.f32 %v309_v44 }
 0x12a   :  { %v723_v52 = vpop.eup %722 }
 0x12b   :  { %v312_v54 = vmul.f32 %v723_v52, %v311_v47 }
 0x12d   :  { %v314_v2 = vmul.f32 %v312_v54, %v304_v37  ;;  %v320_v3 = vrot.slane %v312_v54, %v319_v48 }
 0x12f   :  { %v315_v11 = vsub.f32 %v313_v58, %v314_v2  ;;  %v322_v15 = vmul.f32 %v320_v3, %v806_v18  ;;  %v323_v27 = vmul.f32 %v320_v3, %v812_v21  ;;  %v324_v28 = vmul.f32 %v802_v16, %v320_v3 }
 0x130   :  { %v325_v29 = vmul.f32 %v808_v19, %v320_v3  ;;  %v326_v31 = vmul.f32 %v320_v3, %v827_v30  ;;  %v327_v32 = vmul.f32 %v320_v3, %v839_v39  ;;  %v328_v33 = vmul.f32 %v820_v25, %v320_v3 }
 0x131   :  { %v329_v36 = vmul.f32 %v832_v34, %v320_v3  ;;  %v330_v18 = vmul.f32 %v320_v3, %v810_v20  ;;  %v331_v37 = vmul.f32 %v320_v3, %v834_v35  ;;  %v332_v38 = vmul.f32 %v804_v17, %v320_v3 }
 0x132   :  { %v333_v21 = vmul.f32 %v822_v26, %v320_v3  ;;  %v342_v40 = vrot.slane %v315_v11, %v319_v48  ;;  %v334_v16 = vmul.f32 %v320_v3, %v852_v50  ;;  %v335_v19 = vmul.f32 %v320_v3, %v868_v0 }
 0x133   :  { %v336_v30 = vmul.f32 %v844_v43, %v320_v3  ;;  %v337_v39 = vmul.f32 %v860_v57, %v320_v3 }
 0x134   :  { %v344_v25 = vadd.f32 %v342_v40, %v322_v15  ;;  %v345_v41 = vadd.f32 %v342_v40, %v323_v27  ;;  %v346_v34 = vadd.f32 %v342_v40, %v324_v28  ;;  %v347_v42 = vadd.f32 %v342_v40, %v325_v29 }
 0x135   :  { %v348_v20 = vadd.f32 %v342_v40, %v326_v31  ;;  %v349_v44 = vadd.f32 %v342_v40, %v327_v32  ;;  %v350_v35 = vadd.f32 %v342_v40, %v328_v33  ;;  %v351_v45 = vadd.f32 %v342_v40, %v329_v36 }
 0x136   :  { %v352_v17 = vadd.f32 %v342_v40, %v330_v18  ;;  %v353_v46 = vadd.f32 %v342_v40, %v331_v37  ;;  %v354_v26 = vadd.f32 %v342_v40, %v332_v38  ;;  %v355_v47 = vadd.f32 %v342_v40, %v333_v21 }
 0x137   :  { %v356_v48 = vadd.f32 %v342_v40, %v334_v16  ;;  %v357_v50 = vadd.f32 %v342_v40, %v335_v19  ;;  %v358_v49 = vadd.f32 %v342_v40, %v336_v30  ;;  %v359_v0 = vadd.f32 %v342_v40, %v337_v39 }
 0x138   :  { %v392_v51 = vadd.f32 %v558_v59, %v344_v25  ;;  %v393_v43 = vadd.f32 %v559_v60, %v345_v41  ;;  %v394_v52 = vadd.f32 %v562_v61, %v346_v34  ;;  %v395_v57 = vadd.f32 %v563_v62, %v347_v42 }
 0x139   :  { %v396_v53 = vadd.f32 %v566_v4, %v348_v20  ;;  %v397_v54 = vadd.f32 %v567_v5, %v349_v44  ;;  %v398_v55 = vadd.f32 %v570_v7, %v350_v35  ;;  %v399_v56 = vadd.f32 %v571_v8, %v351_v45 }
 0x13a   :  { %v400_v58 = vadd.f32 %v574_v9, %v352_v17  ;;  %v401_v63 = vadd.f32 %v575_v10, %v353_v46  ;;  %v402_v1 = vadd.f32 %v578_v12, %v354_v26  ;;  %v403_v2 = vadd.f32 %v579_v13, %v355_v47 }
 0x13b   :  { %v404_v3 = vadd.f32 %v582_v14, %v356_v48  ;;  %v405_v6 = vadd.f32 %v583_v22, %v357_v50  ;;  %v406_v11 = vadd.f32 %v586_v23, %v358_v49  ;;  %v407_v15 = vadd.f32 %v587_v24, %v359_v0 }
 0x13c   :  { %v408_v27 = vmax.f32 %v392_v51, 0.0  ;;  %v409_v28 = vmax.f32 %v393_v43, 0.0  ;;  %v410_v29 = vmax.f32 %v394_v52, 0.0  ;;  %v411_v31 = vmax.f32 %v395_v57, 0.0 }
 0x13d   :  { %v412_v59 = vmax.f32 %v396_v53, 0.0  ;;  %v413_v60 = vmax.f32 %v397_v54, 0.0  ;;  %v414_v61 = vmax.f32 %v398_v55, 0.0  ;;  %v415_v62 = vmax.f32 %v399_v56, 0.0 }
 0x13e   :  { %v416_v4 = vmax.f32 %v400_v58, 0.0  ;;  %v417_v5 = vmax.f32 %v401_v63, 0.0  ;;  %v418_v7 = vmax.f32 %v402_v1, 0.0  ;;  %v419_v8 = vmax.f32 %v403_v2, 0.0 }
 0x13f   :  { %v420_v9 = vmax.f32 %v404_v3, 0.0  ;;  %v421_v10 = vmax.f32 %v405_v6, 0.0  ;;  %v422_v12 = vmax.f32 %v406_v11, 0.0  ;;  %v423_v13 = vmax.f32 %v407_v15, 0.0 }
 0x140   :  { %v591_v14 = vpack.c.bf16 %v409_v28, %v408_v27  ;;  %v596_v22 = vpack.c.bf16 %v411_v31, %v410_v29  ;;  %v601_v23 = vpack.c.bf16 %v413_v60, %v412_v59  ;;  %v606_v24 = vpack.c.bf16 %v415_v62, %v414_v61 }
 0x141   :  { %v611_v32 = vpack.c.bf16 %v417_v5, %v416_v4  ;;  %v616_v33 = vpack.c.bf16 %v419_v8, %v418_v7  ;;  %v621_v36 = vpack.c.bf16 %v421_v10, %v420_v9  ;;  %v626_v18 = vpack.c.bf16 %v423_v13, %v422_v12 }
 0x142   :  { %592 = vst [vmem:[%s985_s5] sm:$0xff] %v591_v14   ;;  %635 = vst [vmem:[%s985_s5 + $0x8] sm:$0xff] %v596_v22  }
 0x143   :  { %636 = vst [vmem:[%s985_s5 + $0x10] sm:$0xff] %v601_v23   ;;  %637 = vst [vmem:[%s985_s5 + $0x18] sm:$0xff] %v606_v24  }
 0x144   :  { %638 = vst [vmem:[%s985_s5 + $0x20] sm:$0xff] %v611_v32   ;;  %639 = vst [vmem:[%s985_s5 + $0x28] sm:$0xff] %v616_v33  }
 0x145   :  { %640 = vst [vmem:[%s985_s5 + $0x30] sm:$0xff] %v621_v36   ;;  %641 = vst [vmem:[%s985_s5 + $0x38] sm:$0xff] %v626_v18  }

</bundles_post_ra>
